<compile_context>
chip_gen: v6e
topology: v6e:2x2x1
jax: 0.10.0
libtpu: 0.0.40
codegen_flags: <defaults>
</compile_context>

<pallas_src>
import jax
import jax.numpy as jnp
from jax import lax
from jax.experimental import pallas as pl
from jax.experimental.pallas import tpu as pltpu


KSIZE = 3
EPS = 1e-5
NEG_SLOPE = 0.2

# MXU input dtype. bf16 is the native single-pass MXU path on v5e/v6e/v7x;
# accumulation (preferred_element_type) and all IN/LeakyReLU math stay float32.
MXU_DTYPE = jnp.bfloat16


def _fold_weights_banded(w_oihw, W):
    """OIHW (Cout, Cin, 3, 3) -> (3, (W+2)*Cin, W*Cout) banded matmul weights.

    M[kh, p*Cin + ci, w*Cout + co] = w[co, ci, kh, p - w] if 0 <= p - w < 3 else 0,
    so that for a reflect-padded, lane-folded activation slab xp (H+2, (W+2)*Cin)
    the 3x3 convolution is   y (H, W*Cout) = sum_kh  xp[kh:kh+H, :] @ M[kh].
    """
    Cout, Cin, KH, KW = w_oihw.shape
    Wp = W + 2
    wt = jnp.transpose(w_oihw, (2, 3, 1, 0)).astype(jnp.float32)    # (KH, KW, Cin, Cout)
    p = jnp.arange(Wp)[:, None, None]
    k = jnp.arange(KW)[None, :, None]
    w = jnp.arange(W)[None, None, :]
    sel = (p == w + k).astype(jnp.float32)                           # (Wp, KW, W)
    m = jnp.einsum('pkw,hkio->hpiwo', sel, wt)                       # (KH, Wp, Cin, W, Cout)
    return m.reshape(KH, Wp * Cin, W * Cout).astype(MXU_DTYPE)


def _conv_in_lrelu_stage(pad_ref, x2, m_ref, C, Cout, H, W, sum_sel, bcast_sel):
    """One (reflect-pad 3x3 conv -> InstanceNorm -> LeakyReLU) stage.

    pad_ref  : (H+2, (W+2)*Cmax) f32 VMEM scratch (lane prefix [:(W+2)*C] used)
    x2       : (H, W*C) f32 lane-folded activation
    m_ref    : (3, (W+2)*C, W*Cout) banded weights (MXU_DTYPE)
    sum_sel  : (W*Cout, Cout) f32 channel-group sum selector
    bcast_sel: (Cout, W*Cout) f32 channel broadcast selector
    returns (H, W*Cout) f32
    """
    WpC = (W + 2) * C

    # Reflect-pad-1, sourced purely from x2 values (no RAW on the scratch).
    xl = x2[:, C:2 * C]                                   # column w=1   -> left pad
    xr = x2[:, (W - 2) * C:(W - 1) * C]                   # column w=W-2 -> right pad
    rows = jnp.concatenate([xl, x2, xr], axis=1)          # (H, (W+2)*C)
    pad_ref[1:H + 1, 0:WpC] = rows
    pad_ref[0:1, 0:WpC] = rows[1:2, :]                    # top row    <- row 1
    pad_ref[H + 1:H + 2, 0:WpC] = rows[H - 2:H - 1, :]    # bottom row <- row H-2

    xp = pad_ref[0:H + 2, 0:WpC].astype(MXU_DTYPE)        # (H+2, (W+2)*C)

    # 3x3 conv as 3 dense MXU matmuls (one per kernel row), f32 accumulation.
    y = jnp.dot(xp[0:H, :], m_ref[0], preferred_element_type=jnp.float32)
    y = y + jnp.dot(xp[1:H + 1, :], m_ref[1], preferred_element_type=jnp.float32)
    y = y + jnp.dot(xp[2:H + 2, :], m_ref[2], preferred_element_type=jnp.float32)
    # y: (H, W*Cout) f32, fully lane-dense.

    # InstanceNorm2d (affine=False, biased variance), two-pass for accuracy.
    inv_n = 1.0 / (H * W)
    row = jnp.sum(y, axis=0, keepdims=True)                                   # (1, W*Cout)
    mean = jnp.dot(jnp.dot(row, sum_sel, preferred_element_type=jnp.float32) * inv_n,
                   bcast_sel, preferred_element_type=jnp.float32)             # (1, W*Cout)
    d = y - mean
    row2 = jnp.sum(d * d, axis=0, keepdims=True)                              # (1, W*Cout)
    var = jnp.dot(jnp.dot(row2, sum_sel, preferred_element_type=jnp.float32) * inv_n,
                  bcast_sel, preferred_element_type=jnp.float32)              # (1, W*Cout)
    z = d * lax.rsqrt(var + EPS)

    # LeakyReLU(0.2)
    return jnp.where(z > 0, z, NEG_SLOPE * z)


def uvccnn_block_forward(x_nchw, w1_oihw, w2_oihw):
    """Forward pass of UVCCNNlock (down=True).

    x_nchw : (B, Cin, H, W) float32
    w1_oihw: (Cout, Cin, 3, 3)
    w2_oihw: (Cout, Cout, 3, 3)
    returns (B, Cout, H, W)
    """
    B, Cin, H, W = x_nchw.shape
    Cout = w1_oihw.shape[0]
    Cmax = max(Cin, Cout)
    N = W * Cout

    # NCHW -> lane-folded NHWC slab (B, H, W*Cin); banded bf16 weights.
    x = jnp.transpose(x_nchw, (0, 2, 3, 1)).reshape(B, H, W * Cin)
    m1 = _fold_weights_banded(w1_oihw, W)     # (3, (W+2)*Cin,  W*Cout)
    m2 = _fold_weights_banded(w2_oihw, W)     # (3, (W+2)*Cout, W*Cout)

    def kernel(x_ref, m1_ref, m2_ref, o_ref, pad_ref):
        # Channel-group selectors for the InstanceNorm stats (constant-folded).
        sum_sel = (lax.broadcasted_iota(jnp.int32, (N, Cout), 0) % Cout ==
                   lax.broadcasted_iota(jnp.int32, (N, Cout), 1)).astype(jnp.float32)
        bcast_sel = (lax.broadcasted_iota(jnp.int32, (Cout, N), 0) ==
                     lax.broadcasted_iota(jnp.int32, (Cout, N), 1) % Cout).astype(jnp.float32)

        x0 = x_ref[0].astype(jnp.float32)                               # (H, W*Cin)
        y1 = _conv_in_lrelu_stage(pad_ref, x0, m1_ref, Cin, Cout, H, W,
                                  sum_sel, bcast_sel)                   # (H, W*Cout)
        y2 = _conv_in_lrelu_stage(pad_ref, y1, m2_ref, Cout, Cout, H, W,
                                  sum_sel, bcast_sel)                   # (H, W*Cout)
        o_ref[0] = y2.astype(o_ref.dtype)                               # single dense store

    out = pl.pallas_call(
        kernel,
        out_shape=jax.ShapeDtypeStruct((B, H, N), x_nchw.dtype),
        grid_spec=pltpu.PrefetchScalarGridSpec(
            num_scalar_prefetch=0,
            grid=(B,),
            in_specs=[
                pl.BlockSpec((1, H, W * Cin), lambda b: (b, 0, 0)),
                pl.BlockSpec(m1.shape, lambda b: (0, 0, 0)),
                pl.BlockSpec(m2.shape, lambda b: (0, 0, 0)),
            ],
            out_specs=pl.BlockSpec((1, H, N), lambda b: (b, 0, 0)),
            scratch_shapes=[
                # One shared reflect-pad scratch, reused by both stages.
                pltpu.VMEM((H + 2, (W + 2) * Cmax), jnp.float32),
            ],
        ),
        compiler_params=pltpu.CompilerParams(
            dimension_semantics=("parallel",)),
    )(x, m1, m2)

    # (B, H, W*Cout) -> (B, H, W, Cout) -> NCHW
    return jnp.transpose(out.reshape(B, H, W, Cout), (0, 3, 1, 2))


def _reference_forward(x, w1, w2):
    """Pure-JAX reference (XLA conv, f32 HIGHEST) for a numeric sanity check."""
    def stage(h, w):
        hp = jnp.pad(h, ((0, 0), (0, 0), (1, 1), (1, 1)), mode="reflect")
        y = lax.conv_general_dilated(
            hp, w, window_strides=(1, 1), padding="VALID",
            dimension_numbers=("NCHW", "OIHW", "NCHW"),
            precision=lax.Precision.HIGHEST)
        m = jnp.mean(y, axis=(2, 3), keepdims=True)
        v = jnp.mean((y - m) ** 2, axis=(2, 3), keepdims=True)
        y = (y - m) * lax.rsqrt(v + EPS)
        return jnp.where(y > 0, y, NEG_SLOPE * y)
    return stage(stage(x, w1), w2)


if __name__ == "__main__":
    B, Cin, Cout, H, W = 2, 4, 8, 16, 16

    key = jax.random.PRNGKey(0)
    kx, k1, k2 = jax.random.split(key, 3)

    x = jax.random.normal(kx, (B, Cin, H, W), dtype=jnp.float32)
    fan_in1 = Cin * KSIZE * KSIZE
    fan_in2 = Cout * KSIZE * KSIZE
    w1 = jax.random.uniform(k1, (Cout, Cin, KSIZE, KSIZE), jnp.float32,
                            minval=-1.0, maxval=1.0) / jnp.sqrt(fan_in1)
    w2 = jax.random.uniform(k2, (Cout, Cout, KSIZE, KSIZE), jnp.float32,
                            minval=-1.0, maxval=1.0) / jnp.sqrt(fan_in2)

    fwd = jax.jit(uvccnn_block_forward)
    out = fwd(x, w1, w2)
    jax.block_until_ready(out)

    assert out.shape == (B, Cout, H, W), out.shape
    assert out.dtype == jnp.float32

    ref = jax.jit(_reference_forward)(x, w1, w2)
    max_err = float(jnp.max(jnp.abs(out - ref)))
    # bf16 MXU inputs with f32 accumulation / IN / LeakyReLU -> few e-3 worst case.
    assert max_err < 5e-2, f"mismatch vs reference: max abs err = {max_err}"

    print("KERNEL_OK")
</pallas_src>

<mosaic_0001>
module attributes {stable_mosaic.version = 11 : i64} {
  func.func @kernel(%arg0: i32, %arg1: memref<1x16x64xf32, #tpu.memory_space<vmem>>, %arg2: memref<3x72x128xbf16, #tpu.memory_space<vmem>>, %arg3: memref<3x144x128xbf16, #tpu.memory_space<vmem>>, %arg4: memref<1x16x128xf32, #tpu.memory_space<vmem>>, %arg5: memref<18x144xf32, #tpu.memory_space<vmem>>) attributes {dimension_semantics = [#tpu.dimension_semantics<parallel>], iteration_bounds = array<i64: 2>, scalar_prefetch = 0 : i64, scratch_operands = 1 : i64, tpu.core_type = #tpu.core_type<tc>, window_params = [{transform_indices = @transform_0, window_bounds = array<i64: 1, 16, 64>}, {pipeline_mode = #tpu.pipeline_mode<synchronous>, transform_indices = @transform_1, window_bounds = array<i64: 3, 72, 128>}, {pipeline_mode = #tpu.pipeline_mode<synchronous>, transform_indices = @transform_2, window_bounds = array<i64: 3, 144, 128>}, {transform_indices = @transform_3, window_bounds = array<i64: 1, 16, 128>}]} {
    %0 = tpu.iota {dimensions = array<i32: 0>} : vector<128x8xi32>
    %c8_i32 = arith.constant 8 : i32
    %c0_i32 = arith.constant 0 : i32
    %1 = arith.cmpi eq, %c8_i32, %c0_i32 : i32
    %c1_i32 = arith.constant 1 : i32
    %2 = arith.select %1, %c1_i32, %c8_i32 : i32
    %3 = vector.broadcast %2 : i32 to vector<128x8xi32>
    %4 = arith.remsi %0, %3 : vector<128x8xi32>
    %c0_i32_0 = arith.constant 0 : i32
    %5 = vector.broadcast %c0_i32_0 : i32 to vector<128x8xi32>
    %6 = arith.cmpi ne, %4, %5 : vector<128x8xi32>
    %c0_i32_1 = arith.constant 0 : i32
    %7 = vector.broadcast %c0_i32_1 : i32 to vector<128x8xi32>
    %8 = arith.cmpi slt, %4, %7 : vector<128x8xi32>
    %c0_i32_2 = arith.constant 0 : i32
    %9 = arith.cmpi slt, %2, %c0_i32_2 : i32
    %10 = vector.broadcast %9 : i1 to vector<128x8xi1>
    %11 = vector.broadcast %10 : vector<128x8xi1> to vector<128x8xi1>
    %12 = arith.xori %8, %11 : vector<128x8xi1>
    %13 = arith.andi %12, %6 : vector<128x8xi1>
    %14 = vector.broadcast %2 : i32 to vector<128x8xi32>
    %15 = arith.addi %4, %14 : vector<128x8xi32>
    %16 = arith.select %13, %15, %4 : vector<128x8xi1>, vector<128x8xi32>
    %17 = tpu.iota {dimensions = array<i32: 1>} : vector<128x8xi32>
    %18 = arith.cmpi eq, %16, %17 : vector<128x8xi32>
    %19 = arith.extui %18 : vector<128x8xi1> to vector<128x8xi32>
    %20 = arith.sitofp %19 : vector<128x8xi32> to vector<128x8xf32>
    %21 = tpu.iota {dimensions = array<i32: 0>} : vector<8x128xi32>
    %22 = tpu.iota {dimensions = array<i32: 1>} : vector<8x128xi32>
    %c8_i32_3 = arith.constant 8 : i32
    %c0_i32_4 = arith.constant 0 : i32
    %23 = arith.cmpi eq, %c8_i32_3, %c0_i32_4 : i32
    %c1_i32_5 = arith.constant 1 : i32
    %24 = arith.select %23, %c1_i32_5, %c8_i32_3 : i32
    %25 = vector.broadcast %24 : i32 to vector<8x128xi32>
    %26 = arith.remsi %22, %25 : vector<8x128xi32>
    %c0_i32_6 = arith.constant 0 : i32
    %27 = vector.broadcast %c0_i32_6 : i32 to vector<8x128xi32>
    %28 = arith.cmpi ne, %26, %27 : vector<8x128xi32>
    %c0_i32_7 = arith.constant 0 : i32
    %29 = vector.broadcast %c0_i32_7 : i32 to vector<8x128xi32>
    %30 = arith.cmpi slt, %26, %29 : vector<8x128xi32>
    %c0_i32_8 = arith.constant 0 : i32
    %31 = arith.cmpi slt, %24, %c0_i32_8 : i32
    %32 = vector.broadcast %31 : i1 to vector<8x128xi1>
    %33 = vector.broadcast %32 : vector<8x128xi1> to vector<8x128xi1>
    %34 = arith.xori %30, %33 : vector<8x128xi1>
    %35 = arith.andi %34, %28 : vector<8x128xi1>
    %36 = vector.broadcast %24 : i32 to vector<8x128xi32>
    %37 = arith.addi %26, %36 : vector<8x128xi32>
    %38 = arith.select %35, %37, %26 : vector<8x128xi1>, vector<8x128xi32>
    %39 = arith.cmpi eq, %21, %38 : vector<8x128xi32>
    %40 = arith.extui %39 : vector<8x128xi1> to vector<8x128xi32>
    %41 = arith.sitofp %40 : vector<8x128xi32> to vector<8x128xf32>
    %c0 = arith.constant 0 : index
    %c0_9 = arith.constant 0 : index
    %c0_10 = arith.constant 0 : index
    %42 = vector.load %arg1[%c0, %c0_9, %c0_10] : memref<1x16x64xf32, #tpu.memory_space<vmem>>, vector<1x16x64xf32>
    %43 = vector.shape_cast %42 : vector<1x16x64xf32> to vector<16x64xf32>
    %44 = vector.extract_strided_slice %43 {offsets = [0, 4], sizes = [16, 4], strides = [1, 1]} : vector<16x64xf32> to vector<16x4xf32>
    %45 = vector.extract_strided_slice %43 {offsets = [0, 56], sizes = [16, 4], strides = [1, 1]} : vector<16x64xf32> to vector<16x4xf32>
    %46 = tpu.concatenate %44, %43, %45 in 1 : vector<16x4xf32>, vector<16x64xf32>, vector<16x4xf32> -> vector<16x72xf32>
    %c1 = arith.constant 1 : index
    %c0_11 = arith.constant 0 : index
    %47 = vector.load %arg5[%c1, %c0_11] : memref<18x144xf32, #tpu.memory_space<vmem>>, vector<16x72xf32>
    tpu.vector_store %arg5[%c1, %c0_11], %46 {strides = array<i32>} : memref<18x144xf32, #tpu.memory_space<vmem>>, vector<16x72xf32>,
    %48 = vector.extract_strided_slice %46 {offsets = [1, 0], sizes = [1, 72], strides = [1, 1]} : vector<16x72xf32> to vector<1x72xf32>
    %c0_12 = arith.constant 0 : index
    %c0_13 = arith.constant 0 : index
    %49 = vector.load %arg5[%c0_12, %c0_13] : memref<18x144xf32, #tpu.memory_space<vmem>>, vector<1x72xf32>
    tpu.vector_store %arg5[%c0_12, %c0_13], %48 {strides = array<i32>} : memref<18x144xf32, #tpu.memory_space<vmem>>, vector<1x72xf32>,
    %50 = vector.extract_strided_slice %46 {offsets = [14, 0], sizes = [1, 72], strides = [1, 1]} : vector<16x72xf32> to vector<1x72xf32>
    %c17 = arith.constant 17 : index
    %c0_14 = arith.constant 0 : index
    %51 = vector.load %arg5[%c17, %c0_14] : memref<18x144xf32, #tpu.memory_space<vmem>>, vector<1x72xf32>
    tpu.vector_store %arg5[%c17, %c0_14], %50 {strides = array<i32>} : memref<18x144xf32, #tpu.memory_space<vmem>>, vector<1x72xf32>,
    %c0_15 = arith.constant 0 : index
    %c0_16 = arith.constant 0 : index
    %52 = vector.load %arg5[%c0_15, %c0_16] : memref<18x144xf32, #tpu.memory_space<vmem>>, vector<18x72xf32>
    %53 = arith.truncf %52 : vector<18x72xf32> to vector<18x72xbf16>
    %54 = vector.extract_strided_slice %53 {offsets = [0, 0], sizes = [16, 72], strides = [1, 1]} : vector<18x72xbf16> to vector<16x72xbf16>
    %c0_17 = arith.constant 0 : index
    %c0_18 = arith.constant 0 : index
    %c0_19 = arith.constant 0 : index
    %55 = vector.load %arg2[%c0_17, %c0_18, %c0_19] : memref<3x72x128xbf16, #tpu.memory_space<vmem>>, vector<1x72x128xbf16>
    %56 = vector.shape_cast %55 : vector<1x72x128xbf16> to vector<72x128xbf16>
    %cst = arith.constant dense<0.000000e+00> : vector<16x128xf32>
    %57 = tpu.matmul %54, %56, %cst {dimension_numbers = #tpu.dot_dimension_numbers<[1], [0], [0], [1], [0, 0, 1, 1], [], []>} : vector<16x72xbf16>, vector<72x128xbf16>, vector<16x128xf32> -> vector<16x128xf32>
    %58 = vector.extract_strided_slice %53 {offsets = [1, 0], sizes = [16, 72], strides = [1, 1]} : vector<18x72xbf16> to vector<16x72xbf16>
    %c1_20 = arith.constant 1 : index
    %c0_21 = arith.constant 0 : index
    %c0_22 = arith.constant 0 : index
    %59 = vector.load %arg2[%c1_20, %c0_21, %c0_22] : memref<3x72x128xbf16, #tpu.memory_space<vmem>>, vector<1x72x128xbf16>
    %60 = vector.shape_cast %59 : vector<1x72x128xbf16> to vector<72x128xbf16>
    %cst_23 = arith.constant dense<0.000000e+00> : vector<16x128xf32>
    %61 = tpu.matmul %58, %60, %cst_23 {dimension_numbers = #tpu.dot_dimension_numbers<[1], [0], [0], [1], [0, 0, 1, 1], [], []>} : vector<16x72xbf16>, vector<72x128xbf16>, vector<16x128xf32> -> vector<16x128xf32>
    %62 = arith.addf %57, %61 : vector<16x128xf32>
    %63 = vector.extract_strided_slice %53 {offsets = [2, 0], sizes = [16, 72], strides = [1, 1]} : vector<18x72xbf16> to vector<16x72xbf16>
    %c2 = arith.constant 2 : index
    %c0_24 = arith.constant 0 : index
    %c0_25 = arith.constant 0 : index
    %64 = vector.load %arg2[%c2, %c0_24, %c0_25] : memref<3x72x128xbf16, #tpu.memory_space<vmem>>, vector<1x72x128xbf16>
    %65 = vector.shape_cast %64 : vector<1x72x128xbf16> to vector<72x128xbf16>
    %cst_26 = arith.constant dense<0.000000e+00> : vector<16x128xf32>
    %66 = tpu.matmul %63, %65, %cst_26 {dimension_numbers = #tpu.dot_dimension_numbers<[1], [0], [0], [1], [0, 0, 1, 1], [], []>} : vector<16x72xbf16>, vector<72x128xbf16>, vector<16x128xf32> -> vector<16x128xf32>
    %67 = arith.addf %62, %66 : vector<16x128xf32>
    %cst_27 = arith.constant dense<0.000000e+00> : vector<128xf32>
    %68 = vector.multi_reduction <add>, %67, %cst_27 [0] : vector<16x128xf32> to vector<128xf32>
    %69 = vector.shape_cast %68 : vector<128xf32> to vector<1x128xf32>
    %cst_28 = arith.constant dense<0.000000e+00> : vector<1x8xf32>
    %70 = tpu.matmul %69, %20, %cst_28 {dimension_numbers = #tpu.dot_dimension_numbers<[1], [0], [0], [1], [0, 0, 1, 1], [], []>} : vector<1x128xf32>, vector<128x8xf32>, vector<1x8xf32> -> vector<1x8xf32>
    %cst_29 = arith.constant 3.906250e-03 : f32
    %71 = vector.broadcast %cst_29 : f32 to vector<1x8xf32>
    %72 = arith.mulf %70, %71 : vector<1x8xf32>
    %cst_30 = arith.constant dense<0.000000e+00> : vector<1x128xf32>
    %73 = tpu.matmul %72, %41, %cst_30 {dimension_numbers = #tpu.dot_dimension_numbers<[1], [0], [0], [1], [0, 0, 1, 1], [], []>} : vector<1x8xf32>, vector<8x128xf32>, vector<1x128xf32> -> vector<1x128xf32>
    %74 = vector.broadcast %73 : vector<1x128xf32> to vector<16x128xf32>
    %75 = arith.subf %67, %74 : vector<16x128xf32>
    %76 = arith.mulf %75, %75 : vector<16x128xf32>
    %cst_31 = arith.constant dense<0.000000e+00> : vector<128xf32>
    %77 = vector.multi_reduction <add>, %76, %cst_31 [0] : vector<16x128xf32> to vector<128xf32>
    %78 = vector.shape_cast %77 : vector<128xf32> to vector<1x128xf32>
    %cst_32 = arith.constant dense<0.000000e+00> : vector<1x8xf32>
    %79 = tpu.matmul %78, %20, %cst_32 {dimension_numbers = #tpu.dot_dimension_numbers<[1], [0], [0], [1], [0, 0, 1, 1], [], []>} : vector<1x128xf32>, vector<128x8xf32>, vector<1x8xf32> -> vector<1x8xf32>
    %cst_33 = arith.constant 3.906250e-03 : f32
    %80 = vector.broadcast %cst_33 : f32 to vector<1x8xf32>
    %81 = arith.mulf %79, %80 : vector<1x8xf32>
    %cst_34 = arith.constant dense<0.000000e+00> : vector<1x128xf32>
    %82 = tpu.matmul %81, %41, %cst_34 {dimension_numbers = #tpu.dot_dimension_numbers<[1], [0], [0], [1], [0, 0, 1, 1], [], []>} : vector<1x8xf32>, vector<8x128xf32>, vector<1x128xf32> -> vector<1x128xf32>
    %cst_35 = arith.constant 9.99999974E-6 : f32
    %83 = vector.broadcast %cst_35 : f32 to vector<1x128xf32>
    %84 = arith.addf %82, %83 : vector<1x128xf32>
    %85 = math.rsqrt %84 : vector<1x128xf32>
    %86 = vector.broadcast %85 : vector<1x128xf32> to vector<16x128xf32>
    %87 = arith.mulf %75, %86 : vector<16x128xf32>
    %cst_36 = arith.constant 0.000000e+00 : f32
    %88 = vector.broadcast %cst_36 : f32 to vector<16x128xf32>
    %89 = arith.cmpf ogt, %87, %88 : vector<16x128xf32>
    %cst_37 = arith.constant 2.000000e-01 : f32
    %90 = vector.broadcast %cst_37 : f32 to vector<16x128xf32>
    %91 = arith.mulf %90, %87 : vector<16x128xf32>
    %92 = arith.select %89, %87, %91 : vector<16x128xi1>, vector<16x128xf32>
    %93 = vector.extract_strided_slice %92 {offsets = [0, 8], sizes = [16, 8], strides = [1, 1]} : vector<16x128xf32> to vector<16x8xf32>
    %94 = vector.extract_strided_slice %92 {offsets = [0, 112], sizes = [16, 8], strides = [1, 1]} : vector<16x128xf32> to vector<16x8xf32>
    %95 = tpu.concatenate %93, %92, %94 in 1 : vector<16x8xf32>, vector<16x128xf32>, vector<16x8xf32> -> vector<16x144xf32>
    %c1_38 = arith.constant 1 : index
    %c0_39 = arith.constant 0 : index
    %96 = vector.load %arg5[%c1_38, %c0_39] : memref<18x144xf32, #tpu.memory_space<vmem>>, vector<16x144xf32>
    tpu.vector_store %arg5[%c1_38, %c0_39], %95 {strides = array<i32>} : memref<18x144xf32, #tpu.memory_space<vmem>>, vector<16x144xf32>,
    %97 = vector.extract_strided_slice %95 {offsets = [1, 0], sizes = [1, 144], strides = [1, 1]} : vector<16x144xf32> to vector<1x144xf32>
    %c0_40 = arith.constant 0 : index
    %c0_41 = arith.constant 0 : index
    %98 = vector.load %arg5[%c0_40, %c0_41] : memref<18x144xf32, #tpu.memory_space<vmem>>, vector<1x144xf32>
    tpu.vector_store %arg5[%c0_40, %c0_41], %97 {strides = array<i32>} : memref<18x144xf32, #tpu.memory_space<vmem>>, vector<1x144xf32>,
    %99 = vector.extract_strided_slice %95 {offsets = [14, 0], sizes = [1, 144], strides = [1, 1]} : vector<16x144xf32> to vector<1x144xf32>
    %c17_42 = arith.constant 17 : index
    %c0_43 = arith.constant 0 : index
    %100 = vector.load %arg5[%c17_42, %c0_43] : memref<18x144xf32, #tpu.memory_space<vmem>>, vector<1x144xf32>
    tpu.vector_store %arg5[%c17_42, %c0_43], %99 {strides = array<i32>} : memref<18x144xf32, #tpu.memory_space<vmem>>, vector<1x144xf32>,
    %c0_44 = arith.constant 0 : index
    %c0_45 = arith.constant 0 : index
    %101 = vector.load %arg5[%c0_44, %c0_45] : memref<18x144xf32, #tpu.memory_space<vmem>>, vector<18x144xf32>
    %102 = arith.truncf %101 : vector<18x144xf32> to vector<18x144xbf16>
    %103 = vector.extract_strided_slice %102 {offsets = [0, 0], sizes = [16, 144], strides = [1, 1]} : vector<18x144xbf16> to vector<16x144xbf16>
    %c0_46 = arith.constant 0 : index
    %c0_47 = arith.constant 0 : index
    %c0_48 = arith.constant 0 : index
    %104 = vector.load %arg3[%c0_46, %c0_47, %c0_48] : memref<3x144x128xbf16, #tpu.memory_space<vmem>>, vector<1x144x128xbf16>
    %105 = vector.shape_cast %104 : vector<1x144x128xbf16> to vector<144x128xbf16>
    %cst_49 = arith.constant dense<0.000000e+00> : vector<16x128xf32>
    %106 = tpu.matmul %103, %105, %cst_49 {dimension_numbers = #tpu.dot_dimension_numbers<[1], [0], [0], [1], [0, 0, 1, 1], [], []>} : vector<16x144xbf16>, vector<144x128xbf16>, vector<16x128xf32> -> vector<16x128xf32>
    %107 = vector.extract_strided_slice %102 {offsets = [1, 0], sizes = [16, 144], strides = [1, 1]} : vector<18x144xbf16> to vector<16x144xbf16>
    %c1_50 = arith.constant 1 : index
    %c0_51 = arith.constant 0 : index
    %c0_52 = arith.constant 0 : index
    %108 = vector.load %arg3[%c1_50, %c0_51, %c0_52] : memref<3x144x128xbf16, #tpu.memory_space<vmem>>, vector<1x144x128xbf16>
    %109 = vector.shape_cast %108 : vector<1x144x128xbf16> to vector<144x128xbf16>
    %cst_53 = arith.constant dense<0.000000e+00> : vector<16x128xf32>
    %110 = tpu.matmul %107, %109, %cst_53 {dimension_numbers = #tpu.dot_dimension_numbers<[1], [0], [0], [1], [0, 0, 1, 1], [], []>} : vector<16x144xbf16>, vector<144x128xbf16>, vector<16x128xf32> -> vector<16x128xf32>
    %111 = arith.addf %106, %110 : vector<16x128xf32>
    %112 = vector.extract_strided_slice %102 {offsets = [2, 0], sizes = [16, 144], strides = [1, 1]} : vector<18x144xbf16> to vector<16x144xbf16>
    %c2_54 = arith.constant 2 : index
    %c0_55 = arith.constant 0 : index
    %c0_56 = arith.constant 0 : index
    %113 = vector.load %arg3[%c2_54, %c0_55, %c0_56] : memref<3x144x128xbf16, #tpu.memory_space<vmem>>, vector<1x144x128xbf16>
    %114 = vector.shape_cast %113 : vector<1x144x128xbf16> to vector<144x128xbf16>
    %cst_57 = arith.constant dense<0.000000e+00> : vector<16x128xf32>
    %115 = tpu.matmul %112, %114, %cst_57 {dimension_numbers = #tpu.dot_dimension_numbers<[1], [0], [0], [1], [0, 0, 1, 1], [], []>} : vector<16x144xbf16>, vector<144x128xbf16>, vector<16x128xf32> -> vector<16x128xf32>
    %116 = arith.addf %111, %115 : vector<16x128xf32>
    %cst_58 = arith.constant dense<0.000000e+00> : vector<128xf32>
    %117 = vector.multi_reduction <add>, %116, %cst_58 [0] : vector<16x128xf32> to vector<128xf32>
    %118 = vector.shape_cast %117 : vector<128xf32> to vector<1x128xf32>
    %cst_59 = arith.constant dense<0.000000e+00> : vector<1x8xf32>
    %119 = tpu.matmul %118, %20, %cst_59 {dimension_numbers = #tpu.dot_dimension_numbers<[1], [0], [0], [1], [0, 0, 1, 1], [], []>} : vector<1x128xf32>, vector<128x8xf32>, vector<1x8xf32> -> vector<1x8xf32>
    %cst_60 = arith.constant 3.906250e-03 : f32
    %120 = vector.broadcast %cst_60 : f32 to vector<1x8xf32>
    %121 = arith.mulf %119, %120 : vector<1x8xf32>
    %cst_61 = arith.constant dense<0.000000e+00> : vector<1x128xf32>
    %122 = tpu.matmul %121, %41, %cst_61 {dimension_numbers = #tpu.dot_dimension_numbers<[1], [0], [0], [1], [0, 0, 1, 1], [], []>} : vector<1x8xf32>, vector<8x128xf32>, vector<1x128xf32> -> vector<1x128xf32>
    %123 = vector.broadcast %122 : vector<1x128xf32> to vector<16x128xf32>
    %124 = arith.subf %116, %123 : vector<16x128xf32>
    %125 = arith.mulf %124, %124 : vector<16x128xf32>
    %cst_62 = arith.constant dense<0.000000e+00> : vector<128xf32>
    %126 = vector.multi_reduction <add>, %125, %cst_62 [0] : vector<16x128xf32> to vector<128xf32>
    %127 = vector.shape_cast %126 : vector<128xf32> to vector<1x128xf32>
    %cst_63 = arith.constant dense<0.000000e+00> : vector<1x8xf32>
    %128 = tpu.matmul %127, %20, %cst_63 {dimension_numbers = #tpu.dot_dimension_numbers<[1], [0], [0], [1], [0, 0, 1, 1], [], []>} : vector<1x128xf32>, vector<128x8xf32>, vector<1x8xf32> -> vector<1x8xf32>
    %cst_64 = arith.constant 3.906250e-03 : f32
    %129 = vector.broadcast %cst_64 : f32 to vector<1x8xf32>
    %130 = arith.mulf %128, %129 : vector<1x8xf32>
    %cst_65 = arith.constant dense<0.000000e+00> : vector<1x128xf32>
    %131 = tpu.matmul %130, %41, %cst_65 {dimension_numbers = #tpu.dot_dimension_numbers<[1], [0], [0], [1], [0, 0, 1, 1], [], []>} : vector<1x8xf32>, vector<8x128xf32>, vector<1x128xf32> -> vector<1x128xf32>
    %cst_66 = arith.constant 9.99999974E-6 : f32
    %132 = vector.broadcast %cst_66 : f32 to vector<1x128xf32>
    %133 = arith.addf %131, %132 : vector<1x128xf32>
    %134 = math.rsqrt %133 : vector<1x128xf32>
    %135 = vector.broadcast %134 : vector<1x128xf32> to vector<16x128xf32>
    %136 = arith.mulf %124, %135 : vector<16x128xf32>
    %cst_67 = arith.constant 0.000000e+00 : f32
    %137 = vector.broadcast %cst_67 : f32 to vector<16x128xf32>
    %138 = arith.cmpf ogt, %136, %137 : vector<16x128xf32>
    %cst_68 = arith.constant 2.000000e-01 : f32
    %139 = vector.broadcast %cst_68 : f32 to vector<16x128xf32>
    %140 = arith.mulf %139, %136 : vector<16x128xf32>
    %141 = arith.select %138, %136, %140 : vector<16x128xi1>, vector<16x128xf32>
    %c0_69 = arith.constant 0 : index
    %c0_70 = arith.constant 0 : index
    %c0_71 = arith.constant 0 : index
    %142 = vector.load %arg4[%c0_69, %c0_70, %c0_71] : memref<1x16x128xf32, #tpu.memory_space<vmem>>, vector<1x16x128xf32>
    %143 = vector.shape_cast %142 : vector<1x16x128xf32> to vector<16x128xf32>
    %144 = vector.shape_cast %141 : vector<16x128xf32> to vector<1x16x128xf32>
    tpu.vector_store %arg4[%c0_69, %c0_70, %c0_71], %144 {strides = array<i32>} : memref<1x16x128xf32, #tpu.memory_space<vmem>>, vector<1x16x128xf32>,
    return
  }
  func.func @transform_0(%arg0: i32) -> (i32, i32, i32) {
    %c0_i32 = arith.constant 0 : i32
    %c0_i32_0 = arith.constant 0 : i32
    %c0_i32_1 = arith.constant 0 : i32
    return %arg0, %c0_i32, %c0_i32_0 : i32, i32, i32
  }
  func.func @transform_1(%arg0: i32) -> (i32, i32, i32) {
    %c0_i32 = arith.constant 0 : i32
    %c0_i32_0 = arith.constant 0 : i32
    %c0_i32_1 = arith.constant 0 : i32
    %c0_i32_2 = arith.constant 0 : i32
    return %c0_i32, %c0_i32_0, %c0_i32_1 : i32, i32, i32
  }
  func.func @transform_2(%arg0: i32) -> (i32, i32, i32) {
    %c0_i32 = arith.constant 0 : i32
    %c0_i32_0 = arith.constant 0 : i32
    %c0_i32_1 = arith.constant 0 : i32
    %c0_i32_2 = arith.constant 0 : i32
    return %c0_i32, %c0_i32_0, %c0_i32_1 : i32, i32, i32
  }
  func.func @transform_3(%arg0: i32) -> (i32, i32, i32) {
    %c0_i32 = arith.constant 0 : i32
    %c0_i32_0 = arith.constant 0 : i32
    %c0_i32_1 = arith.constant 0 : i32
    return %arg0, %c0_i32, %c0_i32_0 : i32, i32, i32
  }
}

</mosaic_0001>

<bundles_post_ra>
// kernel: uvccnn_block_forward.1
= control target key start
LH: loop header
LB: loop body
LE: loop exit
PB: predicated region body
PF: predicated region fallthrough
CT: control target
= control target key end

     0   :  { %s2569_s12 = smov 0   ;;  %s3213_s0 = inlined_call_operand.vmem [shape: f32[2,16,64], index: 0, kind: input, shape index: {}]   ;;  %s3214_s1 = inlined_call_operand.vmem [shape: bf16[3,72,128], index: 1, kind: input, shape index: {}]   ;;  %s3215_s2 = inlined_call_operand.vmem [shape: bf16[3,144,128], index: 2, kind: input, shape index: {}]   ;;  %s3216_s3 = inlined_call_operand.vmem [shape: f32[2,16,128], index: 3, kind: output, shape index: {}]  }
   0x1 LB: > { %s1965_s13 = sadd.s32 4294967295, %s2536_s12   ;;  %p1969_p0 = scmp.ge.s32.totalorder %s2536_s12, 1  ;;  %s2536_s12 = sphi %s2569_s12, %s13_s12  }
   0x2   : > { %p137_p1 = scmp.lt.s32.totalorder %s2536_s12, 3 }
   0x4   : > { %p138_p2 = pnand %p1969_p0, %p137_p1 }
   0x5   : > { %p161_p3 = scmp.lt.s32.totalorder (!%p138_p2), %s1965_s13, 1  ;;  %s2539_s28 = smov (!%p138_p2), 4  }
   0x6   : > { %141 = sbr.rel (%p138_p2) target bundleno = 2431 (0x97f), region = 32  ;;  %s2540_s29 = smov (!%p138_p2), 124  }
   0x7   : > { %s2542_s9 = smov (!%p138_p2), 12   ;;  %s2545_s27 = smov (!%p138_p2), 8  }
   0x8   : > { %s2547_s6 = smov (!%p138_p2), 24  }
   0xb   : > { %v2538_v0 = vmov 0.0   ;;  %vm562_vm0 = vcmask 1043456   ;;  %v2484_v1 = vld [vmem:[%s3214_s1 + $0x20] ss:$0 sps:$4 sm:$0xff]   ;;  %s3307_s13 = smov (!%p161_p3, %s1965_s13), 1  ;;  %v2485_v4 = vld [vmem:[%s3214_s1 + $0x18] sm:$0xff]   ;;  %v172_v51 = vlaneseq }
   0xc   : > { %2277 = vmatprep.subr.bf16.mxu1 %v2538_v0  ;;  %2263 = vmatprep.subr.bf16.mxu0 %v2538_v0  ;;  %v637_v2 = vsel %vm562_vm0, %v2484_v1, 0  ;;  %v2486_v3 = vld [vmem:[%s3214_s1 + $0x44] ss:$0 sps:$4 sm:$0xff]   ;;  %s2167_s18 = sshll.u32 %s3307_s13, 4  ;;  %v2487_v7 = vld [vmem:[%s3214_s1 + $0x10] sm:$0xff]   ;;  %v2488_v8 = vld [vmem:[%s3214_s1 + $0x3c] sm:$0xff]  }
   0xd   : > { %2278 = vmatpush3.bf16.msra.mxu1 %v637_v2  ;;  %s165_s23 = scalar_lea.vmem %s3213_s0, %s2167_s18  ;;  %v564_v5 = vsel %vm562_vm0, %v2486_v3, 0  ;;  %vm3220_vm1 = vmmov 0   ;;  %v2490_v10 = vld [vmem:[%s3214_s1 + $0x34] sm:$0xff]   ;;  %v2489_v11 = vld [vmem:[%s3214_s1 + $0x8] sm:$0xff]   ;;  %v2491_v13 = vld [vmem:[%s3214_s1] sm:$0xff]   ;;  %vm468_vm2 = vcmask 31744   ;;  %s170_s11 = scalar_lea.vmem %s3216_s3, %s2167_s18 }
   0xe   : > { %2279 = vmatprep.subr.bf16.mxu1 %v2538_v0  ;;  %v446_v6 = vld [vmem:[%s165_s23] sm:$0xff]  ;;  %2264 = vmatpush3.bf16.msra.mxu0 %v564_v5  ;;  %v447_v9 = vld [vmem:[%s165_s23 + $0x8] sm:$0xff]  ;;  %vm471_vm3 = vcmask 556032   ;;  %vm487_vm4 = vcmask 581632   ;;  %vm3219_vm5 = vcmask 1040384   ;;  %vm483_vm6 = vcmask 588801  }
   0xf   : > { %456 = vrot.lane.b32.xlu1 %v446_v6, %s2539_s28  ;;  %450 = vrot.lane.b32.xlu0 %v446_v6, %s2540_s29  ;;  %v2492_v12 = vld [vmem:[%s3214_s1 + $0x2c] sm:$0xff]   ;;  %v2493_v14 = vld [vmem:[%s3214_s1 + $0x24] sm:$0xff]   ;;  %vm485_vm7 = vcmask 588800   ;;  %vm3218_vm8 = vsmask.f32 7424  ;;  %vm3217_vm9 = vcmask 1046528  }
  0x10   : > { %2265 = vmatprep.subr.bf16.mxu0 %v2538_v0  ;;  %2287 = vmatprep.mubr.msk.bf16.mxu1 %vm3220_vm1, %v2538_v0  ;;  %v2494_v37 = vld [vmem:[%s3214_s1 + $0x68] ss:$0 sps:$4 sm:$0xff]   ;;  %v2495_v44 = vld [vmem:[%s3214_s1 + $0x60] sm:$0xff]   ;;  %v2496_v45 = vld [vmem:[%s3214_s1 + $0x58] sm:$0xff]   ;;  %v2671_v52 = vshrl.u32 %v172_v51, 7  ;;  %v2675_v54 = vand.u32 127, %v172_v51 }
  0x11   : > { %2280 = vmatpush3.bf16.msra.mxu1 %v2485_v4  ;;  %2273 = vmatprep.mubr.msk.bf16.mxu0 %vm3220_vm1, %v2538_v0  ;;  %v727_v42 = vsel %vm562_vm0, %v2494_v37, 0  ;;  %v2497_v46 = vld [vmem:[%s3214_s1 + $0x50] sm:$0xff]   ;;  %v2498_v47 = vld [vmem:[%s3214_s1 + $0x48] sm:$0xff]   ;;  %v2543_v1 = vmov 1.0  }
  0x12   : > { %2281 = vmatprep.subr.bf16.mxu1 %v2538_v0  ;;  %2266 = vmatpush3.bf16.msra.mxu0 %v2488_v8  ;;  %v188_v53 = vadd.s32 120, %v2671_v52  ;;  %v187_v55 = vadd.s32 112, %v2671_v52  ;;  %v186_v56 = vadd.s32 104, %v2671_v52  ;;  %v185_v58 = vadd.s32 96, %v2671_v52 }
  0x13   : > { %458 = vrot.lane.b32.xlu1 %v447_v9, %s2539_s28  ;;  %452 = vrot.lane.b32.xlu0 %v447_v9, %s2540_s29  ;;  %v184_v59 = vadd.s32 88, %v2671_v52  ;;  %v193_v37 = vand.u32 7, %v2671_v52  ;;  %s2546_s28 = smov 120  }
  0x14   : > { %2267 = vmatprep.subr.bf16.mxu0 %v2538_v0  ;;  %v298_v57 = vand.u32 7, %v188_v53  ;;  %v291_v60 = vand.u32 7, %v187_v55  ;;  %v284_v61 = vand.u32 7, %v186_v56  ;;  %v277_v63 = vand.u32 7, %v185_v58 }
  0x15   : > { %2282 = vmatpush3.bf16.msra.mxu1 %v2487_v7  ;;  %v270_v4 = vand.u32 7, %v184_v59  ;;  %v183_v7 = vadd.s32 80, %v2671_v52 }
  0x16   : > { %2283 = vmatprep.subr.bf16.mxu1 %v2538_v0  ;;  %2268 = vmatpush3.bf16.msra.mxu0 %v2490_v10  ;;  %vm2682_vm10 = vcmp.eq.s32.totalorder %v298_v57, %v2675_v54  ;;  %vm2690_vm11 = vcmp.eq.s32.totalorder %v291_v60, %v2675_v54  ;;  %vm2696_vm12 = vcmp.eq.s32.totalorder %v284_v61, %v2675_v54 }
  0x17   : > { %464 = vrot.lane.b32.xlu1 %v447_v9, %s2542_s9  ;;  %462 = vrot.lane.b32.xlu0 %v446_v6, %s2542_s9  ;;  %vm2705_vm13 = vcmp.eq.s32.totalorder %v277_v63, %v2675_v54  ;;  %vm2714_vm14 = vcmp.eq.s32.totalorder %v270_v4, %v2675_v54  ;;  %v263_v8 = vand.u32 7, %v183_v7  ;;  %v182_v9 = vadd.s32 72, %v2671_v52 }
  0x18   : > { %2269 = vmatprep.subr.bf16.mxu0 %v2538_v0 }
  0x19   : > { %2284 = vmatpush3.bf16.msra.mxu1 %v2489_v11  ;;  %vm2729_vm15 = vcmp.eq.s32.totalorder %v263_v8, %v2675_v54  ;;  %v256_v11 = vand.u32 7, %v182_v9 }
  0x1a   : > { %2285 = vmatprep.subr.bf16.mxu1 %v2538_v0  ;;  %2270 = vmatpush3.bf16.msra.mxu0 %v2492_v12  ;;  %v181_v12 = vadd.s32 64, %v2671_v52 }
  0x1b   : > { %2271 = vmatprep.subr.bf16.mxu0 %v2538_v0  ;;  %vm2739_vm0 = vcmp.eq.s32.totalorder %v256_v11, %v2675_v54 }
  0x1d   : > { %2286 = vmatpush3.bf16.msra.mxu1 %v2491_v13 }
  0x1e   : > { %2305 = vmatprep.subr.mxu1 %v2538_v0  ;;  %2272 = vmatpush3.bf16.msra.mxu0 %v2493_v14  ;;  %v249_v14 = vand.u32 7, %v181_v12 }
  0x1f   : > { %2291 = vmatprep.subr.bf16.mxu0 %v2538_v0 }
  0x81   : > { %v457_v15 = vpop.permute.xlu1 %456  ;;  %v451_v16 = vpop.permute.xlu0 %450 }
  0x82   : > { %v469_v19 = vsel %vm468_vm2, %v451_v16, %v457_v15  ;;  %v180_v15 = vadd.s32 56, %v2671_v52  ;;  %v3257_v16 = vmov 0 }
  0x85   : > { %v459_v17 = vpop.permute.xlu1 %458  ;;  %v453_v18 = vpop.permute.xlu0 %452 }
  0x86   : > { %v470_v20 = vsel %vm468_vm2, %v453_v18, %v459_v17  ;;  %vm2749_vm2 = vcmp.eq.s32.totalorder %v249_v14, %v2675_v54  ;;  %v242_v17 = vand.u32 7, %v180_v15  ;;  %v179_v18 = vadd.s32 48, %v2671_v52 }
  0x87   : > { %v3258_v16 = vsel %vm2749_vm2, 4294967295, %v3257_v16  ;;  %v2918_v14 = vsub.s32 0, %v2671_v52 }
  0x89   : > { %v465_v21 = vpop.permute.xlu1 %464  ;;  %v463_v22 = vpop.permute.xlu0 %462 }
  0x8a   : > { %v473_v23 = vsel %vm471_vm3, %v470_v20, %v465_v21  ;;  %v472_v24 = vsel %vm471_vm3, %v469_v19, %v463_v22  ;;  %vm2759_vm3 = vcmp.eq.s32.totalorder %v242_v17, %v2675_v54  ;;  %v3259_v19 = vmov 0 }
  0x8b   : > { %v478_v25 = vrot.slane %v473_v23, 7  ;;  %v492_v26 = vrot.slane %v473_v23, 6  ;;  %v477_v27 = vrot.slane %v472_v24, 7  ;;  %v489_v28 = vrot.slane %v472_v24, 1 }
  0x8c   : > { %v3260_v19 = vsel %vm2759_vm3, 4294967295, %v3259_v19  ;;  %v235_v20 = vand.u32 7, %v179_v18  ;;  %v178_v21 = vadd.s32 40, %v2671_v52  ;;  %v3261_v22 = vmov 0 }
  0x8d   : > { %488 = vst.msk [vmem:[#allocation2 + $0x20] sm:$0x1] %vm487_vm4, %v478_v25  ;;  %494 = vst.msk [vmem:[#allocation2 + $0x21] sm:$0x1] %vm487_vm4, %v492_v26  ;;  %v479_v29 = vsel %vm3219_vm5, %v477_v27, %v478_v25  ;;  %v177_v24 = vadd.s32 32, %v2671_v52  ;;  %v3263_v25 = vmov 0 }
  0x8e   : > { %484 = vst.msk [vmem:[#allocation2] sm:$0xfe] %vm483_vm6, %v477_v27  ;;  %v228_v23 = vand.u32 7, %v178_v21  ;;  %v176_v27 = vadd.s32 24, %v2671_v52 }
  0x8f   : > { %491 = vst.msk [vmem:[#allocation2] sm:$0x1] %vm487_vm4, %v489_v28  ;;  %vm2769_vm4 = vcmp.eq.s32.totalorder %v235_v20, %v2675_v54  ;;  %v221_v26 = vand.u32 7, %v177_v24  ;;  %v3265_v28 = vmov 0 }
  0x90   : > { %486 = vst.msk [vmem:[#allocation2 + $0x10] sm:$0xff] %vm485_vm7, %v479_v29  ;;  %v3262_v22 = vsel %vm2769_vm4, 4294967295, %v3261_v22  ;;  %vm2779_vm6 = vcmp.eq.s32.totalorder %v228_v23, %v2675_v54  ;;  %v214_v29 = vand.u32 7, %v176_v27 }
  0x91   : > { %v3264_v25 = vsel %vm2779_vm6, 4294967295, %v3263_v25 }
  0x94   : > { %v497_v31 = vld [vmem:[#allocation2 + $0x20] sm:$0x3] }
  0x95   : > { %v499_v33 = vpack.c.bf16 %v497_v31, %v497_v31  ;;  %v3267_v31 = vmov 0 }
  0x96   : > { %v495_v30 = vld [vmem:[#allocation2] sm:$0xff] }
  0x97   : > { %v496_v32 = vld [vmem:[#allocation2 + $0x10] sm:$0xff]  ;;  %v528_v36 = vshll.u32 %v499_v33, 16  ;;  %v694_v49 = vrot.slane %v499_v33, 1  ;;  %v174_v33 = vadd.s32 8, %v2671_v52 }
  0x98   : > { %v498_v34 = vpack.c.bf16 %v496_v32, %v495_v30  ;;  %v175_v30 = vadd.s32 16, %v2671_v52 }
  0x99   : > { %v530_v41 = vrot.slane %v528_v36, 1  ;;  %v3271_v36 = vmov 0 }
  0x9a   : > { %2288 = vmatmul.mubr.msk.bf16.vlgmr.msra.gmra.mxu1 %vm485_vm7, %v498_v34  ;;  %v523_v35 = vshll.u32 %v498_v34, 16  ;;  %v521_v38 = vshrl.u32 %v498_v34, 16  ;;  %v693_v48 = vrot.slane %v498_v34, 1  ;;  %v207_v32 = vand.u32 7, %v175_v30 }
  0x9b   : > { %2337 = vmatprep.mubr.msk.f32.mxu1 %vm3220_vm1, %v2538_v0  ;;  %2306 = vmatpush3.msk.msra.mxu1 %vm2682_vm10, %v2543_v1  ;;  %v3269_v34 = vmov 0 }
  0x9c   : > { %v525_v39 = vrot.slane %v523_v35, 1  ;;  %v695_v50 = vsel %vm3217_vm9, %v693_v48, %v694_v49  ;;  %2307 = vmatprep.subr.mxu1 %v2538_v0  ;;  %vm2799_vm9 = vcmp.eq.s32.totalorder %v214_v29, %v2675_v54  ;;  %v200_v35 = vand.u32 7, %v174_v33 }
  0x9d   : > { %2308 = vmatpush3.msk.msra.mxu1 %vm2690_vm11, %v2543_v1  ;;  %v3268_v31 = vsel %vm2799_vm9, 4294967295, %v3267_v31 }
  0x9e   : > { %v526_v40 = vor.u32 %v525_v39, %v521_v38  ;;  %2309 = vmatprep.subr.mxu1 %v2538_v0  ;;  %vm2818_vm5 = vcmp.eq.s32.totalorder %v200_v35, %v2675_v54  ;;  %v3273_v38 = vmov 0  ;;  %v435_v39 = vand.u32 7, %v2675_v54 }
  0x9f   : > { %2310 = vmatpush3.msk.msra.mxu1 %vm2696_vm12, %v2543_v1  ;;  %v3272_v36 = vsel %vm2818_vm5, 4294967295, %v3271_v36 }
  0xa0   : > { %v531_v43 = vsel %vm3218_vm8, %v526_v40, %v530_v41  ;;  %2311 = vmatprep.subr.mxu1 %v2538_v0  ;;  %vm2809_vm8 = vcmp.eq.s32.totalorder %v207_v32, %v2675_v54  ;;  %v3275_v40 = vmov 0 }
  0xa1   : > { %2274 = vmatmul.mubr.msk.bf16.vlgmr.msra.gmra.mxu0 %vm485_vm7, %v531_v43  ;;  %2312 = vmatpush3.msk.msra.mxu1 %vm2705_vm13, %v2543_v1  ;;  %v3270_v34 = vsel %vm2809_vm8, 4294967295, %v3269_v34 }
  0xa2   : > { %2292 = vmatpush3.bf16.msra.mxu0 %v727_v42  ;;  %2301 = vmatprep.mubr.msk.bf16.mxu0 %vm3220_vm1, %v2538_v0 }
  0xa3   : > { %2293 = vmatprep.subr.bf16.mxu0 %v2538_v0  ;;  %2313 = vmatprep.subr.mxu1 %v2538_v0 }
  0xa4   : > { %2314 = vmatpush3.msk.msra.mxu1 %vm2714_vm14, %v2543_v1 }
  0xa5   : > { %2315 = vmatprep.subr.mxu1 %v2538_v0 }
  0xa6   : > { %2294 = vmatpush3.bf16.msra.mxu0 %v2495_v44  ;;  %2316 = vmatpush3.msk.msra.mxu1 %vm2729_vm15, %v2543_v1 }
  0xa7   : > { %2295 = vmatprep.subr.bf16.mxu0 %v2538_v0  ;;  %2317 = vmatprep.subr.mxu1 %v2538_v0 }
  0xa8   : > { %2318 = vmatpush3.msk.msra.mxu1 %vm2739_vm0, %v2543_v1 }
  0xa9   : > { %2319 = vmatprep.subr.mxu1 %v2538_v0 }
  0xaa   : > { %2296 = vmatpush3.bf16.msra.mxu0 %v2496_v45  ;;  %2320 = vmatpush3.msk.msra.mxu1 %vm2749_vm2, %v2543_v1 }
  0xab   : > { %2297 = vmatprep.subr.bf16.mxu0 %v2538_v0  ;;  %2321 = vmatprep.subr.mxu1 %v2538_v0 }
  0xac   : > { %2322 = vmatpush3.msk.msra.mxu1 %vm2759_vm3, %v2543_v1 }
  0xad   : > { %2323 = vmatprep.subr.mxu1 %v2538_v0 }
  0xae   : > { %2298 = vmatpush3.bf16.msra.mxu0 %v2497_v46  ;;  %2324 = vmatpush3.msk.msra.mxu1 %vm2769_vm4, %v2543_v1 }
  0xaf   : > { %2299 = vmatprep.subr.bf16.mxu0 %v2538_v0  ;;  %2325 = vmatprep.subr.mxu1 %v2538_v0 }
  0xb0   : > { %2326 = vmatpush3.msk.msra.mxu1 %vm2779_vm6, %v2543_v1 }
  0xb1   : > { %2327 = vmatprep.subr.mxu1 %v2538_v0 }
  0xb2   : > { %2300 = vmatpush3.bf16.msra.mxu0 %v2498_v47 }
  0xb3   : > { %2340 = vmatprep.subr.mxu0 %v2538_v0 }
  0xb5   : > { %2302 = vmatmul.mubr.msk.bf16.vlgmr.msra.gmra.mxu0 %vm485_vm7, %v695_v50  ;;  %vm2789_vm7 = vcmp.eq.s32.totalorder %v221_v26, %v2675_v54 }
  0xb6   : > { %2342 = vmatprep.mubr.msk.f32.mxu0 %vm3220_vm1, %v2538_v0  ;;  %v3266_v28 = vsel %vm2789_vm7, 4294967295, %v3265_v28  ;;  %2328 = vmatpush3.msk.msra.mxu1 %vm2789_vm7, %v2543_v1  ;;  %vm2828_vm1 = vcmp.eq.s32.totalorder %v193_v37, %v2675_v54 }
  0xb7   : > { %2329 = vmatprep.subr.mxu1 %v2538_v0  ;;  %v3274_v38 = vsel %vm2828_vm1, 4294967295, %v3273_v38 }
  0xb8   : > { %2330 = vmatpush3.msk.msra.mxu1 %vm2799_vm9, %v2543_v1 }
  0xb9   : > { %2331 = vmatprep.subr.mxu1 %v2538_v0 }
  0xba   : > { %2332 = vmatpush3.msk.msra.mxu1 %vm2809_vm8, %v2543_v1  ;;  %vm2838_vm8 = vcmp.eq.s32.totalorder %v2671_v52, %v435_v39 }
  0xbb   : > { %2333 = vmatprep.subr.mxu1 %v2538_v0  ;;  %v3276_v40 = vsel %vm2838_vm8, 4294967295, %v3275_v40  ;;  %2341 = vmatpush3.msk.msra.mxu0 %vm2838_vm8, %v2543_v1 }
  0xbc   : > { %2334 = vmatpush3.msk.msra.mxu1 %vm2818_vm5, %v2543_v1  ;;  %2345 = vmatprep.subr.mxu0 %v2538_v0  ;;  %vm3228_vm5 = vcmask 64512  }
  0xbd   : > { %2335 = vmatprep.subr.mxu1 %v2538_v0 }
  0xbe   : > { %2336 = vmatpush3.msk.msra.mxu1 %vm2828_vm1, %v2543_v1  ;;  %vm3277_vm1 = vmmov 0  }
  0xbf   : > { %2380 = vmatprep.subr.mxu1 %v2538_v0 }
 0x15a   : > { %v673_v41 = vpop.f32.mrf.mxu1 }
 0x15c   : > { %v2289_v42 = vpop.f32.mrf.mxu1 }
 0x15d   : > { %v2499_v42 = vld [vmem:[%s3215_s2 + $0x38] sm:$0xff]  }
 0x15e   : > { %v676_v43 = vpop.f32.mrf.mxu1 }
 0x160   : > { %v2290_v44 = vpop.f32.mrf.mxu1 }
 0x161   : > { %v600_v45 = vpop.f32.mrf.mxu0  ;;  %v2544_v44 = vmov 0  }
 0x162   : > { %v674_v53 = vadd.f32 %v673_v41, %v600_v45  ;;  %v2500_v45 = vld [vmem:[%s3215_s2 + $0x30] sm:$0xff]  }
 0x163   : > { %v2275_v46 = vpop.f32.mrf.mxu0 }
 0x164   : > { %v2502_v46 = vld [vmem:[%s3215_s2 + $0x28] sm:$0xff]  }
 0x165   : > { %v603_v47 = vpop.f32.mrf.mxu0 }
 0x166   : > { %v677_v54 = vadd.f32 %v676_v43, %v603_v47  ;;  %v2501_v43 = vld [vmem:[%s3215_s2 + $0x80] sm:$0xff]  }
 0x167   : > { %v2276_v48 = vpop.f32.mrf.mxu0 }
 0x175   : > { %v763_v49 = vpop.f32.mrf.mxu0 }
 0x176   : > { %v770_v56 = vadd.f32 %v763_v49, %v674_v53  ;;  %v2504_v53 = vld [vmem:[%s3215_s2 + $0x20] sm:$0xff]  }
 0x177   : > { %v2303_v50 = vpop.f32.mrf.mxu0 }
 0x178   : > { %v2503_v50 = vld [vmem:[%s3215_s2 + $0x78] sm:$0xff]  }
 0x179   : > { %v766_v55 = vpop.f32.mrf.mxu0 }
 0x17a   : > { %v771_v57 = vadd.f32 %v766_v55, %v677_v54  ;;  %v2505_v54 = vld [vmem:[%s3215_s2 + $0x70] sm:$0xff]   ;;  %v2506_v55 = vld [vmem:[%s3215_s2 + $0x18] sm:$0xff]  }
 0x17b   : > { %v2304_v58 = vpop.f32.mrf.mxu0 }
 0x17c   : > { %v772_v59 = vadd.f32 %v771_v57, %v770_v56  ;;  %v2507_v58 = vld [vmem:[%s3215_s2 + $0x68] sm:$0xff]  }
 0x17e   : > { %v773_v60 = vrot.slane %v772_v59, 4 }
 0x180   : > { %v774_v61 = vadd.f32 %v773_v60, %v772_v59  ;;  %v2508_v59 = vld [vmem:[%s3215_s2 + $0x10] sm:$0xff]  }
 0x182   : > { %v775_v63 = vrot.slane %v774_v61, 2 }
 0x184   : > { %v776_v4 = vadd.f32 %v775_v63, %v774_v61 }
 0x186   : > { %v777_v7 = vrot.slane %v776_v4, 1 }
 0x188   : > { %v778_v8 = vadd.f32 %v777_v7, %v776_v4  ;;  %v2509_v4 = vld [vmem:[%s3215_s2 + $0x60] sm:$0xff]   ;;  %v2510_v7 = vld [vmem:[%s3215_s2 + $0x8] sm:$0xff]  }
 0x18a   : > { %2338 = vmatmul.mubr.f32.vlgmr.msra.gmra.mxu1 %v778_v8 }
 0x18b   : > { %2381 = vmatpush3.msk.msra.mxu1 %vm2838_vm8, %v2543_v1  ;;  %2382 = vmatprep.mubr.msk.f32.mxu1 %vm3277_vm1, %v2538_v0  ;;  %vm3279_vm8 = vnez %v3272_v36 }
 0x18c   : > { %1317 = vmatprep.subr.bf16.mxu1 %v2544_v44 }
 0x24a   : > { %v845_v9 = vpop.f32.mrf.mxu1 }
 0x24b   : > { %v849_v11 = vmul.f32 0.00390625, %v845_v9 }
 0x24c   : > { %v2339_v12 = vpop.f32.mrf.mxu1 }
 0x24d   : > { %2343 = vmatmul.mubr.msk.f32.vlgmr.msra.gmra.mxu0 %vm3228_vm5, %v849_v11  ;;  %vm3278_vm5 = vnez %v3270_v34  ;;  %v2511_v11 = vld [vmem:[%s3215_s2 + $0x58] sm:$0xff]   ;;  %v2512_v12 = vld [vmem:[%s3215_s2] sm:$0xff]  }
 0x24e   : > { %2346 = vmatpush3.msk.msra.mxu0 %vm2682_vm10, %v2543_v1  ;;  %2377 = vmatprep.mubr.msk.f32.mxu0 %vm3277_vm1, %v2538_v0 }
 0x24f   : > { %2347 = vmatprep.subr.mxu0 %v2538_v0 }
 0x250   : > { %2348 = vmatpush3.msk.msra.mxu0 %vm2690_vm11, %v2543_v1 }
 0x251   : > { %2349 = vmatprep.subr.mxu0 %v2538_v0 }
 0x252   : > { %2350 = vmatpush3.msk.msra.mxu0 %vm2696_vm12, %v2543_v1 }
 0x253   : > { %2351 = vmatprep.subr.mxu0 %v2538_v0 }
 0x254   : > { %2352 = vmatpush3.msk.msra.mxu0 %vm2705_vm13, %v2543_v1 }
 0x255   : > { %2353 = vmatprep.subr.mxu0 %v2538_v0 }
 0x256   : > { %2354 = vmatpush3.msk.msra.mxu0 %vm2714_vm14, %v2543_v1 }
 0x257   : > { %2355 = vmatprep.subr.mxu0 %v2538_v0 }
 0x258   : > { %2356 = vmatpush3.msk.msra.mxu0 %vm2729_vm15, %v2543_v1 }
 0x259   : > { %2357 = vmatprep.subr.mxu0 %v2538_v0 }
 0x25a   : > { %2358 = vmatpush3.msk.msra.mxu0 %vm2739_vm0, %v2543_v1 }
 0x25b   : > { %2359 = vmatprep.subr.mxu0 %v2538_v0 }
 0x25c   : > { %2360 = vmatpush3.msk.msra.mxu0 %vm2749_vm2, %v2543_v1 }
 0x25d   : > { %2361 = vmatprep.subr.mxu0 %v2538_v0 }
 0x25e   : > { %2362 = vmatpush3.msk.msra.mxu0 %vm2759_vm3, %v2543_v1  ;;  %vm1164_vm3 = vcmp.lt.s32.totalorder %v172_v51, 144 }
 0x25f   : > { %2363 = vmatprep.subr.mxu0 %v2538_v0 }
 0x260   : > { %2364 = vmatpush3.msk.msra.mxu0 %vm2769_vm4, %v2543_v1 }
 0x261   : > { %2365 = vmatprep.subr.mxu0 %v2538_v0 }
 0x262   : > { %2366 = vmatpush3.msk.msra.mxu0 %vm2779_vm6, %v2543_v1 }
 0x263   : > { %2367 = vmatprep.subr.mxu0 %v2538_v0 }
 0x264   : > { %2368 = vmatpush3.msk.msra.mxu0 %vm2789_vm7, %v2543_v1  ;;  %vm3280_vm7 = vnez %v3274_v38 }
 0x265   : > { %2369 = vmatprep.subr.mxu0 %v2538_v0 }
 0x266   : > { %2370 = vmatpush3.msk.msra.mxu0 %vm2799_vm9, %v2543_v1  ;;  %vm1143_vm9 = vcmask 122880  }
 0x267   : > { %2371 = vmatprep.subr.mxu0 %v2538_v0 }
 0x268   : > { %2372 = vmatpush3.msk.msra.mxu0 %vm3278_vm5, %v2543_v1 }
 0x269   : > { %2373 = vmatprep.subr.mxu0 %v2538_v0 }
 0x26a   : > { %2374 = vmatpush3.msk.msra.mxu0 %vm3279_vm8, %v2543_v1 }
 0x26b   : > { %2375 = vmatprep.subr.mxu0 %v2538_v0 }
 0x26c   : > { %2376 = vmatpush3.msk.msra.mxu0 %vm3280_vm7, %v2543_v1  ;;  %vm3281_vm7 = vcmask 64512  }
 0x26d   : > { %1414 = vmatprep.subr.bf16.mxu0 %v2544_v44 }
 0x30d   : > { %v920_v15 = vpop.f32.mrf.mxu0 }
 0x30e   : > { %v927_v17 = vrot.slane %v920_v15, %v2918_v14 }
 0x30f   : > { %v2344_v18 = vpop.f32.mrf.mxu0 }
 0x310   : > { %v928_v20 = vsub.f32 %v770_v56, %v927_v17  ;;  %v929_v21 = vsub.f32 %v771_v57, %v927_v17  ;;  %v2513_v17 = vld [vmem:[%s3215_s2 + $0x50] sm:$0xff]   ;;  %v2514_v18 = vld [vmem:[%s3215_s2 + $0x40] sm:$0xff]  }
 0x312   : > { %v930_v23 = vmul.f32 %v928_v20, %v928_v20  ;;  %v931_v24 = vmul.f32 %v929_v21, %v929_v21 }
 0x314   : > { %v932_v26 = vadd.f32 %v931_v24, %v930_v23  ;;  %v2548_v23 = vmov 1966171168  }
 0x315   : > { %v1147_v24 = vunpack.c.l.s4 %v2548_v23 }
 0x316   : > { %v933_v27 = vrot.slane %v932_v26, 4 }
 0x318   : > { %v934_v29 = vadd.f32 %v933_v27, %v932_v26 }
 0x31a   : > { %v935_v30 = vrot.slane %v934_v29, 2 }
 0x31c   : > { %v936_v32 = vadd.f32 %v935_v30, %v934_v29  ;;  %v1148_v29 = vunpack.c.0.s8 %v1147_v24 }
 0x31e   : > { %v937_v33 = vrot.slane %v936_v32, 1 }
 0x320   : > { %v938_v35 = vadd.f32 %v937_v33, %v936_v32 }
 0x322   : > { %2378 = vmatmul.mubr.f32.vlgmr.msra.gmra.mxu0 %v938_v35  ;;  %v1151_v35 = vsub.s32 %v1148_v29, %v2671_v52 }
 0x323   : > { %1415 = vmatpush1.bf16.msra.mxu0 %v2499_v42 }
 0x324   : > { %1416 = vmatprep.subr.bf16.mxu0 %v2544_v44 }
 0x327   : > { %1417 = vmatpush1.bf16.msra.mxu0 %v2500_v45 }
 0x328   : > { %1418 = vmatprep.subr.bf16.mxu0 %v2544_v44 }
 0x32b   : > { %1419 = vmatpush1.bf16.msra.mxu0 %v2502_v46 }
 0x32c   : > { %1420 = vmatprep.subr.bf16.mxu0 %v2544_v44 }
 0x32f   : > { %1421 = vmatpush1.bf16.msra.mxu0 %v2504_v53 }
 0x330   : > { %1422 = vmatprep.subr.bf16.mxu0 %v2544_v44 }
 0x333   : > { %1423 = vmatpush1.bf16.msra.mxu0 %v2506_v55 }
 0x334   : > { %1424 = vmatprep.subr.bf16.mxu0 %v2544_v44 }
 0x337   : > { %1425 = vmatpush1.bf16.msra.mxu0 %v2508_v59 }
 0x338   : > { %1426 = vmatprep.subr.bf16.mxu0 %v2544_v44 }
 0x33b   : > { %1427 = vmatpush1.bf16.msra.mxu0 %v2510_v7 }
 0x33c   : > { %1428 = vmatprep.subr.bf16.mxu0 %v2544_v44 }
 0x33f   : > { %1429 = vmatpush1.bf16.msra.mxu0 %v2512_v12 }
 0x340   : > { %1444 = vmatprep.subr.bf16.mxu0 %v2544_v44 }
 0x343   : > { %1445 = vmatpush2.bf16.msra.mxu0 %v2514_v18 }
 0x344   : > { %2385 = vmatprep.subr.mxu0 %v2538_v0 }
 0x3e2   : > { %v1005_v37 = vpop.f32.mrf.mxu0 }
 0x3e3   : > { %v1009_v39 = vmul.f32 0.00390625, %v1005_v37 }
 0x3e4   : > { %v2379_v41 = vpop.f32.mrf.mxu0 }
 0x3e5   : > { %2383 = vmatmul.mubr.msk.f32.vlgmr.msra.gmra.mxu1 %vm3281_vm7, %v1009_v39 }
 0x3e6   : > { %1318 = vmatpush1.bf16.msra.mxu1 %v2501_v43 }
 0x3e7   : > { %1319 = vmatprep.subr.bf16.mxu1 %v2544_v44 }
 0x3ea   : > { %1320 = vmatpush1.bf16.msra.mxu1 %v2503_v50 }
 0x3eb   : > { %1321 = vmatprep.subr.bf16.mxu1 %v2544_v44 }
 0x3ee   : > { %1322 = vmatpush1.bf16.msra.mxu1 %v2505_v54 }
 0x3ef   : > { %1323 = vmatprep.subr.bf16.mxu1 %v2544_v44 }
 0x3f2   : > { %1324 = vmatpush1.bf16.msra.mxu1 %v2507_v58 }
 0x3f3   : > { %1325 = vmatprep.subr.bf16.mxu1 %v2544_v44 }
 0x3f6   : > { %1326 = vmatpush1.bf16.msra.mxu1 %v2509_v4 }
 0x3f7   : > { %1327 = vmatprep.subr.bf16.mxu1 %v2544_v44 }
 0x3fa   : > { %1328 = vmatpush1.bf16.msra.mxu1 %v2511_v11 }
 0x3fb   : > { %1329 = vmatprep.subr.bf16.mxu1 %v2544_v44 }
 0x3fe   : > { %1330 = vmatpush1.bf16.msra.mxu1 %v2513_v17 }
 0x3ff   : > { %1331 = vmatprep.subr.bf16.mxu1 %v2544_v44 }
 0x4a5   : > { %v1079_v47 = vpop.f32.mrf.mxu1 }
 0x4a6   : > { %v1080_v48 = vadd.f32 1e-05, %v1079_v47 }
 0x4a7   : > { %v2384_v49 = vpop.f32.mrf.mxu1 }
 0x4a8   : > { %2526 = vrsqrt.f32 %v1080_v48 }
 0x4b5   : > { %v2527_v56 = vpop.eup %2526 }
 0x4b6   : > { %v1087_v57 = vrot.slane %v2527_v56, %v2918_v14 }
 0x4b8   : > { %v1088_v60 = vmul.f32 %v1087_v57, %v928_v20  ;;  %v1089_v61 = vmul.f32 %v1087_v57, %v929_v21  ;;  %v2515_v20 = vld [vmem:[%s3215_s2 + $0x48] sm:$0xff]  }
 0x4b9   : > { %1332 = vmatpush1.bf16.msra.mxu1 %v2515_v20  ;;  %v2516_v21 = vld [vmem:[%s3215_s2 + $0x88] sm:$0xff]  }
 0x4ba   : > { %vm1090_vm7 = vcmp.gt.f32.partialorder %v1088_v60, 0.0  ;;  %v1092_v63 = vmul.f32 0.2, %v1088_v60  ;;  %v1093_v9 = vmul.f32 0.2, %v1089_v61  ;;  %vm1091_vm8 = vcmp.gt.f32.partialorder %v1089_v61, 0.0  ;;  %1347 = vmatprep.subr.bf16.mxu1 %v2544_v44 }
 0x4bc   : > { %v1094_v8 = vsel %vm1090_vm7, %v1088_v60, %v1092_v63  ;;  %v1095_v15 = vsel %vm1091_vm8, %v1089_v61, %v1093_v9  ;;  %vm3282_vm8 = vcmask 64512   ;;  %vm1137_vm7 = vcmask 130049  }
 0x4bd   : > { %1104 = vrot.lane.b32.xlu1 %v1094_v8, %s2545_s27  ;;  %1098 = vrot.lane.b32.xlu0 %v1094_v8, %s2546_s28  ;;  %vm3283_vm5 = vmmov %vm3282_vm8 }
 0x4be   : > { %1348 = vmatpush2.bf16.msra.mxu1 %v2516_v21  ;;  %vm3284_vm6 = vmmov %vm3283_vm5 }
 0x4bf   : > { %1542 = vmatprep.subr.bf16.mxu1 %v2544_v44  ;;  %vm3285_vm4 = vmmov %vm3283_vm5 }
 0x4c1   : > { %1100 = vrot.lane.b32.xlu1 %v1095_v15, %s2546_s28  ;;  %1110 = vrot.lane.b32.xlu0 %v1094_v8, %s2547_s6 }
 0x4c5   : > { %1112 = vrot.lane.b32.xlu1 %v1095_v15, %s2547_s6  ;;  %1106 = vrot.lane.b32.xlu0 %v1095_v15, %s2545_s27 }
 0x52f   : > { %v1105_v26 = vpop.permute.xlu1 %1104  ;;  %v1099_v27 = vpop.permute.xlu0 %1098 }
 0x530   : > { %v1116_v30 = vsel %vm3282_vm8, %v1099_v27, %v1105_v26  ;;  %vm1140_vm8 = vcmask 130048  }
 0x531   : > { %v1124_v32 = vrot.slane %v1116_v30, 7 }
 0x533   : > { %1136 = vst [vmem:[#allocation2] sm:$0xfe] %v1124_v32  ;;  %v1101_v33 = vpop.permute.xlu1 %1100  ;;  %v1111_v37 = vpop.permute.xlu0 %1110 }
 0x534   : > { %v1118_v39 = vsel %vm3283_vm5, %v1105_v26, %v1111_v37  ;;  %vm3286_vm5 = vcmask 1040384  }
 0x535   : > { %v1125_v41 = vrot.slane %v1118_v39, 7  ;;  %v1145_v42 = vcombine.low %v1116_v30, %v1118_v39  ;;  %vm3287_vm2 = vmmov %vm3286_vm5 }
 0x537   : > { %1138 = vst.msk [vmem:[#allocation2 + $0x8] sm:$0xfe] %vm1137_vm7, %v1125_v41  ;;  %v1152_v43 = vrot.slane %v1145_v42, %v1151_v35  ;;  %v1113_v45 = vpop.permute.xlu1 %1112  ;;  %v1107_v46 = vpop.permute.xlu0 %1106  ;;  %v2518_v42 = vld [vmem:[%s3215_s2 + $0xc0] sm:$0xff]   ;;  %vm3293_vm7 = vnez %v3262_v22 }
 0x538   : > { %v1117_v47 = vsel %vm3284_vm6, %v1101_v33, %v1107_v46  ;;  %v1119_v48 = vsel %vm3285_vm4, %v1107_v46, %v1113_v45  ;;  %v2517_v33 = vld [vmem:[%s3215_s2 + $0xc8] sm:$0xff]   ;;  %vm3291_vm4 = vnez %v3258_v16  ;;  %v2520_v45 = vld [vmem:[%s3215_s2 + $0xb0] sm:$0xff]   ;;  %vm3292_vm6 = vnez %v3260_v19 }
 0x539   : > { %v1153_v49 = vcombine.high %v1152_v43, %v1152_v43  ;;  %v1126_v50 = vrot.slane %v1117_v47, 7  ;;  %v1128_v53 = vrot.slane %v1119_v48, 7  ;;  %v1168_v52 = vcombine.high %v1117_v47, %v1119_v48  ;;  %v2519_v43 = vld [vmem:[%s3215_s2 + $0xb8] sm:$0xff]   ;;  %v2521_v46 = vld [vmem:[%s3215_s2 + $0xa8] sm:$0xff]   ;;  %v2522_v47 = vld [vmem:[%s3215_s2 + $0xa0] sm:$0xff]  }
 0x53a   : > { %v2523_v48 = vld [vmem:[%s3215_s2 + $0x98] sm:$0xff]  }
 0x53b   : > { %v1160_v54 = vrot.slane %v1153_v49, %v1151_v35  ;;  %v1127_v55 = vsel %vm3286_vm5, %v1124_v32, %v1126_v50  ;;  %v1129_v56 = vsel %vm3287_vm2, %v1125_v41, %v1128_v53  ;;  %1142 = vst [vmem:[#allocation2 + $0x20] sm:$0x1] %v1126_v50  ;;  %1144 = vst.msk [vmem:[#allocation2 + $0x28] sm:$0x1] %vm1143_vm9, %v1128_v53  ;;  %vm3288_vm9 = vsmask.f32 7424 }
 0x53c   : > { %v1175_v57 = vrot.slane %v1168_v52, %v1151_v35  ;;  %1139 = vst [vmem:[#allocation2 + $0x10] sm:$0xff] %v1127_v55  ;;  %1141 = vst.msk [vmem:[#allocation2 + $0x18] sm:$0xff] %vm1140_vm8, %v1129_v56  ;;  %vm3295_vm5 = vnez %v3266_v28  ;;  %v2524_v49 = vld [vmem:[%s3215_s2 + $0x90] sm:$0xff]  }
 0x53d   : > { %1166 = vst.msk [vmem:[#allocation2] ss:$8 sm:$0x3] %vm1164_vm3, %v1160_v54  ;;  %vm3289_vm2 = vmmov %vm3288_vm9  ;;  %v2525_v50 = vld [vmem:[%s3215_s2 + $0xd0] sm:$0xff]  }
 0x53e   : > { %v1182_v58 = vrot.slane %v1175_v57, %v1151_v35 }
 0x540   : > { %v1183_v59 = vcombine.high %v1182_v58, %v1182_v58 }
 0x542   : > { %1186 = vst.msk [vmem:[#allocation2 + $0x21] ss:$8 sm:$0x3] %vm1164_vm3, %v1183_v59  ;;  %vm3290_vm3 = vcmask 1046528  }
 0x543   : > { %v1191_v60 = vld [vmem:[#allocation2 + $0x18] sm:$0xff] }
 0x544   : > { %v1189_v61 = vld [vmem:[#allocation2 + $0x8] sm:$0xff]  ;;  %v1188_v63 = vld [vmem:[#allocation2] sm:$0xff] }
 0x545   : > { %v1195_v4 = vpack.c.bf16 %v1191_v60, %v1189_v61  ;;  %v3006_v51 = vpack.c.bf16 %v1127_v55, %v1188_v63 }
 0x547   : > { %2100 = vmatprep.mubr.msk.bf16.mxu0 %vm1140_vm8, %v1195_v4  ;;  %v1250_v7 = vshll.u32 %v1195_v4, 16  ;;  %v1238_v8 = vshll.u32 %v3006_v51, 16  ;;  %v1248_v20 = vshrl.u32 %v1195_v4, 16  ;;  %v1236_v23 = vshrl.u32 %v3006_v51, 16 }
 0x548   : > { %1447 = vmatmul.mubr.bf16.vlgmr.msra.gmra.mxu0 %v3006_v51  ;;  %v1481_v39 = vrot.slane %v1195_v4, 1  ;;  %v1478_v52 = vrot.slane %v3006_v51, 1 }
 0x549   : > { %v1193_v9 = vld [vmem:[#allocation2 + $0x28] sm:$0x3]  ;;  %v1192_v11 = vld [vmem:[#allocation2 + $0x20] sm:$0x3]  ;;  %v1252_v15 = vrot.slane %v1250_v7, 1  ;;  %v1240_v18 = vrot.slane %v1238_v8, 1  ;;  %2386 = vmatpush3.msk.msra.mxu0 %vm2682_vm10, %v2543_v1  ;;  %2417 = vmatprep.mubr.msk.f32.mxu0 %vm3277_vm1, %v2538_v0 }
 0x54a   : > { %v1197_v12 = vpack.c.bf16 %v1193_v9, %v1193_v9  ;;  %v3011_v17 = vpack.c.bf16 %v1192_v11, %v1192_v11  ;;  %2387 = vmatprep.subr.mxu0 %v2538_v0 }
 0x54b   : > { %2388 = vmatpush3.msk.msra.mxu0 %vm2690_vm11, %v2543_v1  ;;  %v1253_v26 = vor.u32 %v1252_v15, %v1248_v20  ;;  %v1241_v29 = vor.u32 %v1240_v18, %v1236_v23 }
 0x54c   : > { %v1255_v21 = vshll.u32 %v1197_v12, 16  ;;  %v1243_v24 = vshll.u32 %v3011_v17, 16  ;;  %2389 = vmatprep.subr.mxu0 %v2538_v0  ;;  %v1482_v32 = vrot.slane %v1197_v12, 1  ;;  %v1479_v53 = vrot.slane %v3011_v17, 1 }
 0x54d   : > { %2390 = vmatpush3.msk.msra.mxu0 %vm2696_vm12, %v2543_v1 }
 0x54e   : > { %v1257_v27 = vrot.slane %v1255_v21, 1  ;;  %v1245_v30 = vrot.slane %v1243_v24, 1  ;;  %2391 = vmatprep.subr.mxu0 %v2538_v0  ;;  %v1483_v41 = vsel %vm3290_vm3, %v1481_v39, %v1482_v32  ;;  %vm3298_vm3 = vnez %v3272_v36 }
 0x54f   : > { %2392 = vmatpush3.msk.msra.mxu0 %vm2705_vm13, %v2543_v1 }
 0x550   : > { %v1258_v35 = vsel %vm3288_vm9, %v1253_v26, %v1257_v27  ;;  %v1246_v37 = vsel %vm3289_vm2, %v1241_v29, %v1245_v30  ;;  %2393 = vmatprep.subr.mxu0 %v2538_v0  ;;  %vm3296_vm9 = vnez %v3268_v31  ;;  %vm3297_vm2 = vnez %v3270_v34 }
 0x551   : > { %2090 = vmatprep.mubr.msk.bf16.mxu1 %vm1140_vm8, %v1258_v35  ;;  %2394 = vmatpush3.msk.msra.mxu0 %vm2714_vm14, %v2543_v1 }
 0x552   : > { %1350 = vmatmul.mubr.bf16.vlgmr.msra.gmra.mxu1 %v1246_v37  ;;  %2395 = vmatprep.subr.mxu0 %v2538_v0 }
 0x553   : > { %1543 = vmatpush1.bf16.msra.mxu1 %v2517_v33  ;;  %2128 = vmatprep.mubr.msk.bf16.mxu1 %vm1140_vm8, %v1483_v41  ;;  %vm3294_vm8 = vnez %v3264_v25 }
 0x554   : > { %1544 = vmatprep.subr.bf16.mxu1 %v2544_v44  ;;  %2396 = vmatpush3.msk.msra.mxu0 %vm2729_vm15, %v2543_v1 }
 0x555   : > { %2397 = vmatprep.subr.mxu0 %v2538_v0 }
 0x556   : > { %2398 = vmatpush3.msk.msra.mxu0 %vm2739_vm0, %v2543_v1 }
 0x557   : > { %1545 = vmatpush1.bf16.msra.mxu1 %v2518_v42  ;;  %2399 = vmatprep.subr.mxu0 %v2538_v0 }
 0x558   : > { %1546 = vmatprep.subr.bf16.mxu1 %v2544_v44  ;;  %2400 = vmatpush3.msk.msra.mxu0 %vm3291_vm4, %v2543_v1 }
 0x559   : > { %2401 = vmatprep.subr.mxu0 %v2538_v0 }
 0x55a   : > { %2402 = vmatpush3.msk.msra.mxu0 %vm3292_vm6, %v2543_v1 }
 0x55b   : > { %1547 = vmatpush1.bf16.msra.mxu1 %v2519_v43  ;;  %2403 = vmatprep.subr.mxu0 %v2538_v0 }
 0x55c   : > { %1548 = vmatprep.subr.bf16.mxu1 %v2544_v44  ;;  %2404 = vmatpush3.msk.msra.mxu0 %vm3293_vm7, %v2543_v1 }
 0x55d   : > { %2405 = vmatprep.subr.mxu0 %v2538_v0 }
 0x55e   : > { %2406 = vmatpush3.msk.msra.mxu0 %vm3294_vm8, %v2543_v1 }
 0x55f   : > { %1549 = vmatpush1.bf16.msra.mxu1 %v2520_v45  ;;  %2407 = vmatprep.subr.mxu0 %v2538_v0 }
 0x560   : > { %1550 = vmatprep.subr.bf16.mxu1 %v2544_v44  ;;  %2408 = vmatpush3.msk.msra.mxu0 %vm3295_vm5, %v2543_v1 }
 0x561   : > { %2409 = vmatprep.subr.mxu0 %v2538_v0 }
 0x562   : > { %2410 = vmatpush3.msk.msra.mxu0 %vm3296_vm9, %v2543_v1  ;;  %vm3299_vm9 = vnez %v3274_v38 }
 0x563   : > { %1551 = vmatpush1.bf16.msra.mxu1 %v2521_v46  ;;  %2411 = vmatprep.subr.mxu0 %v2538_v0 }
 0x564   : > { %1552 = vmatprep.subr.bf16.mxu1 %v2544_v44  ;;  %2412 = vmatpush3.msk.msra.mxu0 %vm3297_vm2, %v2543_v1 }
 0x565   : > { %2413 = vmatprep.subr.mxu0 %v2538_v0 }
 0x566   : > { %2414 = vmatpush3.msk.msra.mxu0 %vm3298_vm3, %v2543_v1 }
 0x567   : > { %1553 = vmatpush1.bf16.msra.mxu1 %v2522_v47  ;;  %2415 = vmatprep.subr.mxu0 %v2538_v0 }
 0x568   : > { %1554 = vmatprep.subr.bf16.mxu1 %v2544_v44  ;;  %2416 = vmatpush3.msk.msra.mxu0 %vm3299_vm9, %v2543_v1  ;;  %vm3300_vm9 = vcmask 1046528  }
 0x569   : > { %2420 = vmatprep.subr.mxu0 %v2538_v0  ;;  %v1480_v54 = vsel %vm3300_vm9, %v1478_v52, %v1479_v53 }
 0x56b   : > { %1555 = vmatpush1.bf16.msra.mxu1 %v2523_v48 }
 0x56c   : > { %1556 = vmatprep.subr.bf16.mxu1 %v2544_v44 }
 0x56f   : > { %1557 = vmatpush1.bf16.msra.mxu1 %v2524_v49 }
 0x570   : > { %1572 = vmatprep.subr.bf16.mxu1 %v2544_v44 }
 0x573   : > { %1573 = vmatpush2.bf16.msra.mxu1 %v2525_v50 }
 0x574   : > { %2425 = vmatprep.subr.mxu1 %v2538_v0 }
 0x576   : > { %1575 = vmatmul.mubr.bf16.vlgmr.msra.gmra.mxu1 %v1480_v54 }
 0x577   : > { %2426 = vmatpush3.msk.msra.mxu1 %vm2682_vm10, %v2543_v1  ;;  %2457 = vmatprep.mubr.msk.f32.mxu1 %vm3277_vm1, %v2538_v0  ;;  %vm3301_vm10 = vnez %v3268_v31 }
 0x578   : > { %2427 = vmatprep.subr.mxu1 %v2538_v0 }
 0x579   : > { %2428 = vmatpush3.msk.msra.mxu1 %vm2690_vm11, %v2543_v1  ;;  %vm3302_vm11 = vnez %v3274_v38 }
 0x57a   : > { %2429 = vmatprep.subr.mxu1 %v2538_v0 }
 0x57b   : > { %2430 = vmatpush3.msk.msra.mxu1 %vm2696_vm12, %v2543_v1  ;;  %vm3303_vm12 = vnez %v3276_v40 }
 0x57c   : > { %2431 = vmatprep.subr.mxu1 %v2538_v0 }
 0x57d   : > { %2432 = vmatpush3.msk.msra.mxu1 %vm2705_vm13, %v2543_v1  ;;  %vm3304_vm13 = vcmask 64512  }
 0x57e   : > { %2433 = vmatprep.subr.mxu1 %v2538_v0 }
 0x57f   : > { %2434 = vmatpush3.msk.msra.mxu1 %vm2714_vm14, %v2543_v1 }
 0x580   : > { %2435 = vmatprep.subr.mxu1 %v2538_v0 }
 0x581   : > { %2436 = vmatpush3.msk.msra.mxu1 %vm2729_vm15, %v2543_v1 }
 0x582   : > { %2437 = vmatprep.subr.mxu1 %v2538_v0 }
 0x583   : > { %2438 = vmatpush3.msk.msra.mxu1 %vm2739_vm0, %v2543_v1 }
 0x584   : > { %2439 = vmatprep.subr.mxu1 %v2538_v0 }
 0x585   : > { %2440 = vmatpush3.msk.msra.mxu1 %vm3291_vm4, %v2543_v1 }
 0x586   : > { %2441 = vmatprep.subr.mxu1 %v2538_v0 }
 0x587   : > { %2442 = vmatpush3.msk.msra.mxu1 %vm3292_vm6, %v2543_v1 }
 0x588   : > { %2443 = vmatprep.subr.mxu1 %v2538_v0 }
 0x589   : > { %2444 = vmatpush3.msk.msra.mxu1 %vm3293_vm7, %v2543_v1 }
 0x58a   : > { %2445 = vmatprep.subr.mxu1 %v2538_v0 }
 0x58b   : > { %2446 = vmatpush3.msk.msra.mxu1 %vm3294_vm8, %v2543_v1 }
 0x58c   : > { %2447 = vmatprep.subr.mxu1 %v2538_v0 }
 0x58d   : > { %2448 = vmatpush3.msk.msra.mxu1 %vm3295_vm5, %v2543_v1 }
 0x58e   : > { %2449 = vmatprep.subr.mxu1 %v2538_v0 }
 0x58f   : > { %2450 = vmatpush3.msk.msra.mxu1 %vm3301_vm10, %v2543_v1 }
 0x590   : > { %2451 = vmatprep.subr.mxu1 %v2538_v0 }
 0x591   : > { %2452 = vmatpush3.msk.msra.mxu1 %vm3297_vm2, %v2543_v1 }
 0x592   : > { %2453 = vmatprep.subr.mxu1 %v2538_v0 }
 0x593   : > { %2454 = vmatpush3.msk.msra.mxu1 %vm3298_vm3, %v2543_v1 }
 0x594   : > { %2455 = vmatprep.subr.mxu1 %v2538_v0 }
 0x595   : > { %2456 = vmatpush3.msk.msra.mxu1 %vm3302_vm11, %v2543_v1 }
 0x608   : > { %v1448_v62 = vpop.f32.mrf.mxu0 }
 0x60a   : > { %v1450_v2 = vpop.f32.mrf.mxu0 }
 0x60c   : > { %v1451_v3 = vpop.f32.mrf.mxu0 }
 0x60e   : > { %v1453_v5 = vpop.f32.mrf.mxu0 }
 0x612   : > { %v1351_v6 = vpop.f32.mrf.mxu1 }
 0x613   : > { %v1449_v25 = vadd.f32 %v1448_v62, %v1351_v6 }
 0x614   : > { %v1353_v10 = vpop.f32.mrf.mxu1 }
 0x616   : > { %v1354_v13 = vpop.f32.mrf.mxu1 }
 0x617   : > { %v1452_v28 = vadd.f32 %v1451_v3, %v1354_v13 }
 0x618   : > { %v1356_v16 = vpop.f32.mrf.mxu1 }
 0x636   : > { %v1576_v19 = vpop.f32.mrf.mxu1 }
 0x637   : > { %v1583_v34 = vadd.f32 %v1576_v19, %v1449_v25 }
 0x638   : > { %v1578_v22 = vpop.f32.mrf.mxu1 }
 0x63a   : > { %v1579_v31 = vpop.f32.mrf.mxu1 }
 0x63b   : > { %v1584_v36 = vadd.f32 %v1579_v31, %v1452_v28 }
 0x63c   : > { %v1581_v44 = vpop.f32.mrf.mxu1 }
 0x63d   : > { %v1585_v55 = vadd.f32 %v1584_v36, %v1583_v34 }
 0x63f   : > { %v1586_v56 = vrot.slane %v1585_v55, 4 }
 0x641   : > { %v1587_v38 = vadd.f32 %v1586_v56, %v1585_v55 }
 0x643   : > { %v1588_v57 = vrot.slane %v1587_v38, 2 }
 0x645   : > { %v1589_v58 = vadd.f32 %v1588_v57, %v1587_v38 }
 0x647   : > { %v1590_v59 = vrot.slane %v1589_v58, 1 }
 0x649   : > { %v1591_v60 = vadd.f32 %v1590_v59, %v1589_v58 }
 0x64b   : > { %2418 = vmatmul.mubr.f32.vlgmr.msra.gmra.mxu0 %v1591_v60 }
 0x64c   : > { %2421 = vmatpush3.msk.msra.mxu0 %vm3303_vm12, %v2543_v1  ;;  %2422 = vmatprep.mubr.msk.f32.mxu0 %vm3277_vm1, %v2538_v0 }
 0x64d   : > { %2460 = vmatprep.subr.mxu0 %v2538_v0 }
 0x70b   : > { %v1658_v61 = vpop.f32.mrf.mxu0 }
 0x70c   : > { %v1662_v63 = vmul.f32 0.00390625, %v1658_v61 }
 0x70d   : > { %v2419_v4 = vpop.f32.mrf.mxu0 }
 0x70e   : > { %2423 = vmatmul.mubr.msk.f32.vlgmr.msra.gmra.mxu0 %vm3304_vm13, %v1662_v63 }
 0x70f   : > { %2461 = vmatpush3.msk.msra.mxu0 %vm3303_vm12, %v2543_v1  ;;  %2462 = vmatprep.mubr.msk.f32.mxu0 %vm3277_vm1, %v2538_v0  ;;  %vm3305_vm1 = vmmov %vm3304_vm13 }
 0x7ce   : > { %v1732_v51 = vpop.f32.mrf.mxu0 }
 0x7cf   : > { %v1739_v7 = vrot.slane %v1732_v51, %v2918_v14 }
 0x7d0   : > { %v2424_v8 = vpop.f32.mrf.mxu0 }
 0x7d1   : > { %v1740_v9 = vsub.f32 %v1583_v34, %v1739_v7  ;;  %v1741_v11 = vsub.f32 %v1584_v36, %v1739_v7 }
 0x7d3   : > { %v1742_v12 = vmul.f32 %v1740_v9, %v1740_v9  ;;  %v1743_v15 = vmul.f32 %v1741_v11, %v1741_v11 }
 0x7d5   : > { %v1744_v17 = vadd.f32 %v1743_v15, %v1742_v12 }
 0x7d7   : > { %v1745_v18 = vrot.slane %v1744_v17, 4 }
 0x7d9   : > { %v1746_v20 = vadd.f32 %v1745_v18, %v1744_v17 }
 0x7db   : > { %v1747_v21 = vrot.slane %v1746_v20, 2 }
 0x7dd   : > { %v1748_v23 = vadd.f32 %v1747_v21, %v1746_v20 }
 0x7df   : > { %v1749_v24 = vrot.slane %v1748_v23, 1 }
 0x7e1   : > { %v1750_v40 = vadd.f32 %v1749_v24, %v1748_v23 }
 0x7e3   : > { %2458 = vmatmul.mubr.f32.vlgmr.msra.gmra.mxu1 %v1750_v40 }
 0x8a3   : > { %v1817_v1 = vpop.f32.mrf.mxu1 }
 0x8a4   : > { %v1821_v26 = vmul.f32 0.00390625, %v1817_v1 }
 0x8a5   : > { %v2459_v0 = vpop.f32.mrf.mxu1 }
 0x8a6   : > { %2463 = vmatmul.mubr.msk.f32.vlgmr.msra.gmra.mxu0 %vm3305_vm1, %v1821_v26 }
 0x966   : > { %v1891_v27 = vpop.f32.mrf.mxu0 }
 0x967   : > { %v1892_v29 = vadd.f32 1e-05, %v1891_v27 }
 0x968   : > { %v2464_v30 = vpop.f32.mrf.mxu0 }
 0x969   : > { %2528 = vrsqrt.f32 %v1892_v29 }
 0x976   : > { %v2529_v32 = vpop.eup %2528 }
 0x977   : > { %v1899_v33 = vrot.slane %v2529_v32, %v2918_v14 }
 0x979   : > { %v1900_v35 = vmul.f32 %v1899_v33, %v1740_v9  ;;  %v1901_v37 = vmul.f32 %v1899_v33, %v1741_v11 }
 0x97b   : > { %vm1902_vm14 = vcmp.gt.f32.partialorder %v1900_v35, 0.0  ;;  %vm1903_vm15 = vcmp.gt.f32.partialorder %v1901_v37, 0.0  ;;  %v1904_v39 = vmul.f32 0.2, %v1900_v35  ;;  %v1905_v41 = vmul.f32 0.2, %v1901_v37 }
 0x97d   : > { %v1906_v42 = vsel %vm1902_vm14, %v1900_v35, %v1904_v39  ;;  %v1907_v43 = vsel %vm1903_vm15, %v1901_v37, %v1905_v41 }
 0x97e   : > { %1908 = vst [vmem:[%s170_s11] sm:$0xff] %v1906_v42  ;;  %1909 = vst [vmem:[%s170_s11 + $0x8] sm:$0xff] %v1907_v43 }
 0x97f PF: > { %s13_s12 = sadd.s32 1, %s2536_s12  }
 0x980   : > { %p10_p4 = scmp.ge.s32.totalorder %s13_s12, 4  }
 0x982   :  { %12 = sbr.rel (!%p10_p4) target bundleno = 1 (0x1), region = 67 }

</bundles_post_ra>
